<compile_context>
chip_gen: v7x
topology: tpu7x:2x2x1
jax: 0.10.0
libtpu: 0.0.40
codegen_flags: <defaults>
</compile_context>

<pallas_src>
import jax
import jax.numpy as jnp
from jax.experimental import pallas as pl
from jax.experimental.pallas import tpu as pltpu

EPS = 1e-5
LANE = 128


def _round_up(v, m):
    return (v + m - 1) // m * m


# ----------------------------------------------------------------------------- kernel
def _residual_block_kernel(x_ref, wx_ref, w2_ref, w3a_ref, bias_ref, o_ref):
    """One (TILE_N, Cp) batch tile of the fused block.

    x_ref   : (TILE_N, Cp)       activations (compute_dtype)
    wx_ref  : (Cp, 2*Cp)         [w1 | w3b_eff]  (shared-LHS merge)
    w2_ref  : (Cp, Cp)           w2 with BN1 folded in
    w3a_ref : (Cp, Cp)           w3a with BN2 folded in
    bias_ref: (8, Cp) f32        row0=b1, row1=b3_total (b2 folded through w3a)
    o_ref   : (TILE_N, Cp)
    """
    cp = w2_ref.shape[0]
    x = x_ref[...]
    b1 = bias_ref[0:1, :]
    b3 = bias_ref[1:2, :]

    # Both x-LHS matmuls in one MXU pass: x @ [w1 | w3b_eff]  (f32 accumulation)
    xw = jnp.dot(x, wx_ref[...], preferred_element_type=jnp.float32)   # (TN, 2*Cp)
    m1 = xw[:, :cp]        # x @ w1            (lane-aligned static slice: free view)
    m3b = xw[:, cp:]       # x @ w3b_eff

    # left branch: Linear1 + ReLU ; Dropout(p=0.1) is identity in eval mode
    h = jnp.maximum(m1 + b1, 0.0)
    # Linear2 + BatchNorm1d (BN folded into w2; its bias folded into b3_total)
    h2 = jnp.dot(h.astype(w2_ref.dtype), w2_ref[...],
                 preferred_element_type=jnp.float32)

    # bottleneck: Linear(2*out,out) on concat([left, x]) == h2 @ w3a_eff + x @ w3b_eff,
    # with BatchNorm1d folded in and all biases pre-combined into b3, then ReLU.
    z = jnp.dot(h2.astype(w3a_ref.dtype), w3a_ref[...],
                preferred_element_type=jnp.float32) + m3b + b3
    o_ref[...] = jnp.maximum(z, 0.0).astype(o_ref.dtype)


# ----------------------------------------------------------------------------- param prep (run once)
def prepare_params(params, compute_dtype=jnp.bfloat16):
    """One-time host-side preprocessing: eval-mode BN folding, bias folding,
    lane padding to a multiple of 128, [w1 | w3b] concat, bias packing, dtype cast.
    Returns a dict consumed by `residual_block_bottleneck`."""
    f32 = jnp.float32
    c = params["w1"].shape[1]

    # ---- eval-mode BatchNorm folding (f32) ----
    s1 = params["g1"] * jax.lax.rsqrt(params["rv1"] + EPS)            # (1, C)
    w2_eff = params["w2"] * s1                                        # scale output columns
    b2_eff = (params["b2"] - params["rm1"]) * s1 + params["bt1"]
    s2 = params["g2"] * jax.lax.rsqrt(params["rv2"] + EPS)
    w3a_eff = params["w3a"] * s2
    w3b_eff = params["w3b"] * s2
    b3_eff = (params["b3"] - params["rm2"]) * s2 + params["bt2"]
    # Fold b2_eff through w3a_eff so the kernel skips the h2 bias add.
    b3_total = b3_eff + b2_eff.astype(f32) @ w3a_eff.astype(f32)

    # ---- lane-dense padding of the feature dim to a multiple of 128 ----
    cp = _round_up(c, LANE)

    def pad2(a):
        a = a.astype(f32)
        return jnp.pad(a, ((0, cp - a.shape[0]), (0, cp - a.shape[1])))

    wx = jnp.concatenate([pad2(params["w1"]), pad2(w3b_eff)], axis=1)  # (Cp, 2*Cp)
    w2_p = pad2(w2_eff)
    w3a_p = pad2(w3a_eff)

    # Pack the two bias rows into one (8, Cp) f32 slab (single tiny operand DMA).
    bias = jnp.zeros((8, cp), f32)
    bias = bias.at[0, :c].set(params["b1"][0].astype(f32))
    bias = bias.at[1, :c].set(b3_total[0].astype(f32))

    return dict(
        wx=wx.astype(compute_dtype),
        w2=w2_p.astype(compute_dtype),
        w3a=w3a_p.astype(compute_dtype),
        bias=bias,
        c=c, cp=cp,
        compute_dtype=compute_dtype,
    )


# ----------------------------------------------------------------------------- wrapper
def residual_block_bottleneck(x, prep, *, tile_n=256, out_dtype=jnp.float32):
    """x: (N, C). `prep` from prepare_params(). Returns (N, C) in out_dtype."""
    n, c_in = x.shape
    c, cp = prep["c"], prep["cp"]
    assert c_in == c, "shortcut=None path requires inchannel == outchannel"
    compute_dtype = prep["compute_dtype"]

    # Batch tiling: keep >= 2 grid steps (amortize ~0.35us/step overhead, hide the
    # serial m1->h->h2->z MXU chain, and let the "parallel" axis split across both
    # v7x TensorCores), but never exceed the requested tile.
    tile_n = max(8, min(tile_n, _round_up(max(n // 2, 1), 8)))
    n_p = _round_up(n, tile_n)
    # Pad x directly in compute_dtype (single pass over x).
    x_p = jnp.pad(x.astype(compute_dtype), ((0, n_p - n), (0, cp - c)))

    # VMEM budget: weights/bias single-buffered, x/out double-buffered, plus the
    # f32 (TN, 2*Cp) xw intermediate and f32 h/h2/z; 2x headroom. Floor at 32 MiB
    # (never below v6e's default) so v5e's 16 MiB default scoped limit is raised.
    itemsize = jnp.dtype(compute_dtype).itemsize
    weight_bytes = 4 * cp * cp * itemsize + 8 * cp * 4
    io_bytes = 2 * tile_n * cp * (itemsize + jnp.dtype(out_dtype).itemsize)
    scratch_bytes = tile_n * 2 * cp * 4 + 3 * tile_n * cp * 4
    vmem_limit = int(min(100 << 20,
                         max(32 << 20,
                             2 * (weight_bytes + io_bytes + scratch_bytes) + (4 << 20))))

    # NOTE: for very large C (>= ~2048 bf16 / ~1024 f32 on v7x's 64 MiB VMEM) the
    # resident Cp x Cp weights would need a K-reduction grid axis ("arbitrary",
    # f32 VMEM accumulator, pl.when init/finalize). Not required at these sizes.
    # TODO(synk): add the K-tiling path when targeting C >= ~1024 on v7x.
    resident = dict(pipeline_mode=pl.Buffered(1))   # constant blocks: single-buffer
    grid = (n_p // tile_n,)
    out_p = pl.pallas_call(
        _residual_block_kernel,
        out_shape=jax.ShapeDtypeStruct((n_p, cp), out_dtype),
        grid=grid,
        in_specs=[
            pl.BlockSpec((tile_n, cp), lambda i: (i, 0)),              # x: tiled over batch
            pl.BlockSpec((cp, 2 * cp), lambda i: (0, 0), **resident),  # [w1 | w3b]: VMEM-resident
            pl.BlockSpec((cp, cp), lambda i: (0, 0), **resident),      # w2_eff
            pl.BlockSpec((cp, cp), lambda i: (0, 0), **resident),      # w3a_eff
            pl.BlockSpec((8, cp), lambda i: (0, 0), **resident),       # packed biases
        ],
        out_specs=pl.BlockSpec((tile_n, cp), lambda i: (i, 0)),
        compiler_params=pltpu.CompilerParams(
            dimension_semantics=("parallel",),       # megacore-shardable batch axis
            vmem_limit_bytes=vmem_limit),
    )(x_p, prep["wx"], prep["w2"], prep["w3a"], prep["bias"])

    return out_p[:n, :c]


# ----------------------------------------------------------------------------- params & reference
def init_params(key, inchannel, outchannel):
    """Deterministic synthetic parameters matching the PyTorch module shapes."""
    assert inchannel == outchannel
    ks = jax.random.split(key, 10)

    def uni(k, shape, fan_in):
        bound = 1.0 / jnp.sqrt(fan_in)
        return jax.random.uniform(k, shape, jnp.float32, -bound, bound)

    # left Linear 1: torch weight (out, in) -> pass transposed (in, out)
    w1 = uni(ks[0], (inchannel, outchannel), inchannel)
    b1 = uni(ks[1], (1, outchannel), inchannel)
    # left Linear 2
    w2 = uni(ks[2], (outchannel, outchannel), outchannel)
    b2 = uni(ks[3], (1, outchannel), outchannel)
    # BatchNorm1d (left), eval-mode running stats
    g1 = jax.random.uniform(ks[4], (1, outchannel), jnp.float32, 0.5, 1.5)
    bt1 = jax.random.uniform(ks[5], (1, outchannel), jnp.float32, -0.5, 0.5)
    rm1 = jax.random.normal(ks[6], (1, outchannel), jnp.float32) * 0.1
    rv1 = jnp.abs(jax.random.normal(ks[7], (1, outchannel), jnp.float32)) * 0.1 + 0.9
    # bottleneck Linear: torch weight (out, 2*out) -> transposed (2*out, out), split in halves
    w3 = uni(ks[8], (2 * outchannel, outchannel), 2 * outchannel)
    w3a = w3[:outchannel]   # multiplies the left output (first half of the concat)
    w3b = w3[outchannel:]   # multiplies the residual x (second half of the concat)
    b3 = uni(ks[9], (1, outchannel), 2 * outchannel)
    # BatchNorm1d (bottleneck)
    g2 = jnp.ones((1, outchannel), jnp.float32)
    bt2 = jnp.zeros((1, outchannel), jnp.float32)
    rm2 = jnp.zeros((1, outchannel), jnp.float32)
    rv2 = jnp.ones((1, outchannel), jnp.float32)

    return dict(w1=w1, b1=b1, w2=w2, b2=b2,
                g1=g1, bt1=bt1, rm1=rm1, rv1=rv1,
                w3a=w3a, w3b=w3b, b3=b3,
                g2=g2, bt2=bt2, rm2=rm2, rv2=rv2)


def _reference(x, p):
    """Pure-JAX reference of the same eval-mode forward (no folding/fusion)."""
    h = jnp.maximum(x @ p["w1"] + p["b1"], 0.0)
    h = h @ p["w2"] + p["b2"]
    h = (h - p["rm1"]) / jnp.sqrt(p["rv1"] + EPS) * p["g1"] + p["bt1"]
    cat = jnp.concatenate([h, x], axis=-1)
    w3 = jnp.concatenate([p["w3a"], p["w3b"]], axis=0)
    z = cat @ w3 + p["b3"]
    z = (z - p["rm2"]) / jnp.sqrt(p["rv2"] + EPS) * p["g2"] + p["bt2"]
    return jnp.maximum(z, 0.0)


# ----------------------------------------------------------------------------- demo
if __name__ == "__main__":
    # Small shapes: N=256 rows (2 batch tiles of 128), C=64 features (padded to 128 lanes).
    N, C = 256, 64

    key = jax.random.PRNGKey(0)
    kx, kp = jax.random.split(key)
    x = jax.random.normal(kx, (N, C), jnp.float32)
    params = init_params(kp, C, C)

    ref = _reference(x, params)

    # f32 compute path — strict check against the unfused reference.
    prep_f32 = prepare_params(params, compute_dtype=jnp.float32)
    out = jax.block_until_ready(residual_block_bottleneck(x, prep_f32, tile_n=256))
    assert out.shape == (N, C)
    assert jnp.allclose(out, ref, atol=1e-4, rtol=1e-4), "f32 kernel mismatch vs reference"

    # bf16 compute path (default; f32 MXU accumulation) — loose check.
    prep_bf16 = prepare_params(params)                       # compute_dtype=bfloat16
    out_bf16 = jax.block_until_ready(residual_block_bottleneck(x, prep_bf16, tile_n=256))
    assert out_bf16.shape == (N, C)
    assert bool(jnp.all(jnp.isfinite(out_bf16)))
    assert jnp.allclose(out_bf16, ref, atol=5e-1, rtol=5e-2), "bf16 kernel drifted too far"

    # TODO(synk): training-mode Dropout RNG and BatchNorm batch-statistics update are not
    # implemented (eval-mode semantics only).
    print("KERNEL_OK")
</pallas_src>

<mosaic_0001>
module attributes {stable_mosaic.version = 11 : i64} {
  func.func @_residual_block_kernel(%arg0: i32, %arg1: memref<128x128xf32, #tpu.memory_space<vmem>>, %arg2: memref<128x256xf32, #tpu.memory_space<vmem>>, %arg3: memref<128x128xf32, #tpu.memory_space<vmem>>, %arg4: memref<128x128xf32, #tpu.memory_space<vmem>>, %arg5: memref<8x128xf32, #tpu.memory_space<vmem>>, %arg6: memref<128x128xf32, #tpu.memory_space<vmem>>) attributes {dimension_semantics = [#tpu.dimension_semantics<parallel>], iteration_bounds = array<i64: 2>, scalar_prefetch = 0 : i64, scratch_operands = 0 : i64, tpu.core_type = #tpu.core_type<tc>, window_params = [{transform_indices = @transform_0, window_bounds = array<i64: 128, 128>}, {pipeline_mode = #tpu.pipeline_mode<synchronous>, transform_indices = @transform_1, window_bounds = array<i64: 128, 256>}, {pipeline_mode = #tpu.pipeline_mode<synchronous>, transform_indices = @transform_2, window_bounds = array<i64: 128, 128>}, {pipeline_mode = #tpu.pipeline_mode<synchronous>, transform_indices = @transform_3, window_bounds = array<i64: 128, 128>}, {pipeline_mode = #tpu.pipeline_mode<synchronous>, transform_indices = @transform_4, window_bounds = array<i64: 8, 128>}, {transform_indices = @transform_5, window_bounds = array<i64: 128, 128>}]} {
    %c0 = arith.constant 0 : index
    %c0_0 = arith.constant 0 : index
    %0 = vector.load %arg1[%c0, %c0_0] : memref<128x128xf32, #tpu.memory_space<vmem>>, vector<128x128xf32>
    %c0_1 = arith.constant 0 : index
    %c0_2 = arith.constant 0 : index
    %1 = vector.load %arg5[%c0_1, %c0_2] : memref<8x128xf32, #tpu.memory_space<vmem>>, vector<1x128xf32>
    %c1 = arith.constant 1 : index
    %c0_3 = arith.constant 0 : index
    %2 = vector.load %arg5[%c1, %c0_3] : memref<8x128xf32, #tpu.memory_space<vmem>>, vector<1x128xf32>
    %c0_4 = arith.constant 0 : index
    %c0_5 = arith.constant 0 : index
    %3 = vector.load %arg2[%c0_4, %c0_5] : memref<128x256xf32, #tpu.memory_space<vmem>>, vector<128x256xf32>
    %cst = arith.constant dense<0.000000e+00> : vector<128x256xf32>
    %4 = tpu.matmul %0, %3, %cst {dimension_numbers = #tpu.dot_dimension_numbers<[1], [0], [0], [1], [0, 0, 1, 1], [], []>} : vector<128x128xf32>, vector<128x256xf32>, vector<128x256xf32> -> vector<128x256xf32>
    %5 = vector.extract_strided_slice %4 {offsets = [0, 0], sizes = [128, 128], strides = [1, 1]} : vector<128x256xf32> to vector<128x128xf32>
    %6 = vector.extract_strided_slice %4 {offsets = [0, 128], sizes = [128, 128], strides = [1, 1]} : vector<128x256xf32> to vector<128x128xf32>
    %7 = vector.broadcast %1 : vector<1x128xf32> to vector<128x128xf32>
    %8 = arith.addf %5, %7 : vector<128x128xf32>
    %cst_6 = arith.constant 0.000000e+00 : f32
    %9 = vector.broadcast %cst_6 : f32 to vector<128x128xf32>
    %10 = arith.maximumf %8, %9 : vector<128x128xf32>
    %c0_7 = arith.constant 0 : index
    %c0_8 = arith.constant 0 : index
    %11 = vector.load %arg3[%c0_7, %c0_8] : memref<128x128xf32, #tpu.memory_space<vmem>>, vector<128x128xf32>
    %cst_9 = arith.constant dense<0.000000e+00> : vector<128x128xf32>
    %12 = tpu.matmul %10, %11, %cst_9 {dimension_numbers = #tpu.dot_dimension_numbers<[1], [0], [0], [1], [0, 0, 1, 1], [], []>} : vector<128x128xf32>, vector<128x128xf32>, vector<128x128xf32> -> vector<128x128xf32>
    %c0_10 = arith.constant 0 : index
    %c0_11 = arith.constant 0 : index
    %13 = vector.load %arg4[%c0_10, %c0_11] : memref<128x128xf32, #tpu.memory_space<vmem>>, vector<128x128xf32>
    %cst_12 = arith.constant dense<0.000000e+00> : vector<128x128xf32>
    %14 = tpu.matmul %12, %13, %cst_12 {dimension_numbers = #tpu.dot_dimension_numbers<[1], [0], [0], [1], [0, 0, 1, 1], [], []>} : vector<128x128xf32>, vector<128x128xf32>, vector<128x128xf32> -> vector<128x128xf32>
    %15 = arith.addf %14, %6 : vector<128x128xf32>
    %16 = vector.broadcast %2 : vector<1x128xf32> to vector<128x128xf32>
    %17 = arith.addf %15, %16 : vector<128x128xf32>
    %cst_13 = arith.constant 0.000000e+00 : f32
    %18 = vector.broadcast %cst_13 : f32 to vector<128x128xf32>
    %19 = arith.maximumf %17, %18 : vector<128x128xf32>
    %c0_14 = arith.constant 0 : index
    %c0_15 = arith.constant 0 : index
    %20 = vector.load %arg6[%c0_14, %c0_15] : memref<128x128xf32, #tpu.memory_space<vmem>>, vector<128x128xf32>
    tpu.vector_store %arg6[%c0_14, %c0_15], %19 {strides = array<i32>} : memref<128x128xf32, #tpu.memory_space<vmem>>, vector<128x128xf32>,
    return
  }
  func.func @transform_0(%arg0: i32) -> (i32, i32) {
    %c0_i32 = arith.constant 0 : i32
    %c0_i32_0 = arith.constant 0 : i32
    return %arg0, %c0_i32 : i32, i32
  }
  func.func @transform_1(%arg0: i32) -> (i32, i32) {
    %c0_i32 = arith.constant 0 : i32
    %c0_i32_0 = arith.constant 0 : i32
    %c0_i32_1 = arith.constant 0 : i32
    return %c0_i32, %c0_i32_0 : i32, i32
  }
  func.func @transform_2(%arg0: i32) -> (i32, i32) {
    %c0_i32 = arith.constant 0 : i32
    %c0_i32_0 = arith.constant 0 : i32
    %c0_i32_1 = arith.constant 0 : i32
    return %c0_i32, %c0_i32_0 : i32, i32
  }
  func.func @transform_3(%arg0: i32) -> (i32, i32) {
    %c0_i32 = arith.constant 0 : i32
    %c0_i32_0 = arith.constant 0 : i32
    %c0_i32_1 = arith.constant 0 : i32
    return %c0_i32, %c0_i32_0 : i32, i32
  }
  func.func @transform_4(%arg0: i32) -> (i32, i32) {
    %c0_i32 = arith.constant 0 : i32
    %c0_i32_0 = arith.constant 0 : i32
    %c0_i32_1 = arith.constant 0 : i32
    return %c0_i32, %c0_i32_0 : i32, i32
  }
  func.func @transform_5(%arg0: i32) -> (i32, i32) {
    %c0_i32 = arith.constant 0 : i32
    %c0_i32_0 = arith.constant 0 : i32
    return %arg0, %c0_i32 : i32, i32
  }
}

</mosaic_0001>

<bundles_post_ra>
// kernel: tpu_custom_call.1
= control target key start
LH: loop header
LB: loop body
LE: loop exit
PB: predicated region body
PF: predicated region fallthrough
CT: control target
= control target key end

     0   :  { %10 = vsyncpa [#allocation3], 0  ;;  %s2050_s0 = inlined_call_operand.hbm [shape: f32[256,128], index: 0, kind: input, shape index: {}]   ;;  %s2051_s1 = inlined_call_operand.hbm [shape: f32[128,256], index: 1, kind: input, shape index: {}]   ;;  %s2052_s2 = inlined_call_operand.hbm [shape: f32[128,128], index: 2, kind: input, shape index: {}]   ;;  %s2053_s3 = inlined_call_operand.hbm [shape: f32[128,128], index: 3, kind: input, shape index: {}]   ;;  %s2054_s4 = inlined_call_operand.vmem [shape: f32[8,128], index: 4, kind: input, shape index: {}]   ;;  %s2055_s5 = inlined_call_operand.hbm [shape: f32[256,128], index: 5, kind: output, shape index: {}]  }
   0x1   :  { %12 = vsyncpa [#allocation3 + $0x1], 0 }
   0x2   :  { %13 = vsyncpa [#allocation6], 0 }
   0x3   :  { %14 = vsyncpa [#allocation9], 0 }
   0x4   :  { %15 = vsyncpa [#allocation4], 0 }
   0x5   :  { %17 = vsyncpa [#allocation4 + $0x1], 0  ;;  %s1638_s18 = smov 0   ;;  %s1640_s19 = smov 0  }
   0x6   :  { %s1642_s20 = smov 0   ;;  %s1644_s21 = smov 0  }
   0x7 LB: > { %s1659_s22 = sadd.s32 4294967295, %s1594_s21   ;;  %s1026_s23 = sadd.s32 4294967294, %s1594_s21   ;;  %s1594_s21 = sphi %s1644_s21, %s2078_s21   ;;  %s1590_s20 = sphi %s1642_s20, %s2077_s20   ;;  %s1586_s19 = sphi %s1640_s19, %s2076_s19   ;;  %s1582_s18 = sphi %s1638_s18, %s2075_s18  }
   0x8   : > { %p43_p0 = scmp.ne.s32.totalorder %s1586_s19, %s1582_s18  ;;  %p2056_p1 = scmp.eq.s32.totalorder %s1659_s22, 0 }
   0x9   : > { %p157_p3 = scmp.eq.s32.totalorder %s1026_s23, 1  ;;  %p1027_p5 = scmp.ge.s32.totalorder %s1594_s21, 1 }
   0xa   : > { %p1668_p4 = por %p2056_p1, %p43_p0  ;;  %p164_p7 = scmp.lt.s32.totalorder %s1594_s21, 3 }
   0xb   : > { %p1673_p6 = por %p157_p3, %p43_p0  ;;  %s1596_s27 = smov [#allocation5]  }
   0xc   : > { %s2059_s24 = scalar_select %p1668_p4, 1, 0 }
   0xd   : > { %s2060_s25 = scalar_select %p1673_p6, 1, 0 }
   0xe   : > { %p1678_p8 = pnand %p1027_p5, %p164_p7  ;;  %s176_s28 = sshll.u32 %s1596_s27, 4  ;;  %s1682_s28 = int_to_ptr.vmem [resolvable:$true] %s176_s28 }
   0xf   : > { %s1597_s30 = smov [#allocation7]   ;;  %s1406_s9 = scalar_lea.hbm %s2051_s1, 4096 }
  0x10   : > { %s2061_s26 = scalar_select %p1678_p8, 1, 0 }
  0x11   : > { %p1338_p9 = pneg %p1678_p8  ;;  %s189_s6 = sshll.u32 %s1597_s30, 4  ;;  %s1693_s6 = int_to_ptr.vmem [resolvable:$true] %s189_s6 }
  0x12   : > { %p1407_p12 = scmp.ne.s32.totalorder %s2051_s1, %s1406_s9  ;;  %p1413_p5 = scmp.lt.u32.totalorder %s1406_s9, %s2051_s1 }
  0x13   : > { %p1689_p11 = pnand %p1338_p9, %p2056_p1 }
  0x15   : > { %p1703_p13 = pneg %p1689_p11 }
  0x17   : > { %p1409_p0 = pnand %p1703_p13, %p1407_p12 }
  0x19   : > { %p1410_p3 = pneg %p1409_p0 }
  0x1b   : > { %p1415_p7 = pnand %p1413_p5, %p1410_p3 }
  0x1d   : > { %1418 = shalt.err (!%p1415_p7)
}
  0x1e   : > { %s1419_s15 = scalar_lea.vmem %s1682_s28, 4096  ;;  %p1427_p2 = scmp.lt.s32.totalorder %s1682_s28, %s1682_s28 }
  0x1f   : > { %p1420_p9 = scmp.ne.s32.totalorder %s1682_s28, %s1419_s15  ;;  %p1428_p6 = scmp.lt.s32.totalorder %s1419_s15, %s1419_s15 }
  0x21   : > { %p1422_p10 = pnand %p1420_p9, %p1703_p13  ;;  %p1429_p12 = por %p1428_p6, %p1427_p2 }
  0x23   : > { %p1423_p1 = pneg %p1422_p10 }
  0x25   : > { %p1430_p0 = pnand %p1429_p12, %p1423_p1 }
  0x27   : > { %1433 = shalt.err (!%p1430_p0)
}
  0x28   : > { %s1598_s16 = smov 256   ;;  %s1599_s17 = smov 16  }
  0x29   : > { %1341 = dma.hbm_to_vmem [thread:$0]  (!%p1689_p11), %s2051_s1, 4096, %s1682_s28, [#allocation6], %s1598_s16, %s1598_s16, %s1599_s17  }
  0x2a   : > { %s1434_s8 = scalar_lea.hbm %s2052_s2, 2048 }
  0x2b   : > { %p1435_p2 = scmp.ne.s32.totalorder %s2052_s2, %s1434_s8  ;;  %p1441_p10 = scmp.lt.u32.totalorder %s1434_s8, %s2052_s2 }
  0x2d   : > { %p1437_p1 = pnand %p1435_p2, %p1703_p13 }
  0x2f   : > { %p1438_p6 = pneg %p1437_p1 }
  0x31   : > { %p1443_p3 = pnand %p1441_p10, %p1438_p6 }
  0x33   : > { %1446 = shalt.err (!%p1443_p3)
}
  0x34   : > { %s1447_s28 = scalar_lea.vmem %s1693_s6, 2048  ;;  %p1455_p12 = scmp.lt.s32.totalorder %s1693_s6, %s1693_s6 }
  0x35   : > { %p1448_p5 = scmp.ne.s32.totalorder %s1693_s6, %s1447_s28  ;;  %p1456_p0 = scmp.lt.s32.totalorder %s1447_s28, %s1447_s28 }
  0x37   : > { %p1450_p7 = pnand %p1448_p5, %p1703_p13  ;;  %p1457_p2 = por %p1456_p0, %p1455_p12 }
  0x39   : > { %p1451_p9 = pneg %p1450_p7 }
  0x3b   : > { %p1458_p1 = pnand %p1457_p2, %p1451_p9 }
  0x3d   : > { %1461 = shalt.err (!%p1458_p1)
}
  0x3e   : > { %s1600_s14 = smov 128   ;;  %s1601_s15 = smov 8  }
  0x3f   : > { %1344 = dma.hbm_to_vmem [thread:$0]  (!%p1689_p11), %s2052_s2, 2048, %s1693_s6, [#allocation6], %s1600_s14, %s1600_s14, %s1601_s15  }
  0x40   : > { %s1602_s23 = smov [#allocation8]   ;;  %s1751_s30 = sadd.s32 1, %s1594_s21  }
  0x41   : > { %s202_s27 = sshll.u32 %s1602_s23, 4  ;;  %s1462_s9 = scalar_lea.hbm %s2053_s3, 2048  ;;  %s203_s27 = int_to_ptr.vmem [resolvable:$true] %s202_s27 }
  0x42   : > { %p1463_p6 = scmp.ne.s32.totalorder %s2053_s3, %s1462_s9  ;;  %p1469_p5 = scmp.lt.u32.totalorder %s1462_s9, %s2053_s3 }
  0x44   : > { %p1465_p10 = pnand %p1463_p6, %p1703_p13 }
  0x46   : > { %p1466_p3 = pneg %p1465_p10 }
  0x48   : > { %p1471_p7 = pnand %p1469_p5, %p1466_p3 }
  0x4a   : > { %1474 = shalt.err (!%p1471_p7)
}
  0x4b   : > { %s1475_s6 = scalar_lea.vmem %s203_s27, 2048  ;;  %p1483_p2 = scmp.lt.s32.totalorder %s203_s27, %s203_s27 }
  0x4c   : > { %p1476_p9 = scmp.ne.s32.totalorder %s203_s27, %s1475_s6  ;;  %p1484_p1 = scmp.lt.s32.totalorder %s1475_s6, %s1475_s6 }
  0x4e   : > { %p1478_p12 = pnand %p1476_p9, %p1703_p13  ;;  %p1485_p4 = por %p1484_p1, %p1483_p2 }
  0x50   : > { %p1479_p0 = pneg %p1478_p12 }
  0x52   : > { %p1486_p8 = pnand %p1485_p4, %p1479_p0 }
  0x54   : > { %1489 = shalt.err (!%p1486_p8)
}
  0x55   : > { %1347 = dma.hbm_to_vmem [thread:$0]  (!%p1689_p11), %s2053_s3, 2048, %s203_s27, [#allocation9], %s1600_s14, %s1600_s14, %s1601_s15  }
  0x56   : > { %s27_s12 = ssub.s32 %s1594_s21, %s1751_s30  ;;  %s30_s29 = sadd.s32 1, %s1590_s20 }
  0x57   : > { %p28_p4 = scmp.eq.s32.totalorder %s27_s12, 0  ;;  %p37_p8 = scmp.ne.s32.totalorder %s1590_s20, %s1586_s19 }
  0x58   : > { %p38_p13 = scmp.eq.s32.totalorder %s1594_s21, 0  ;;  %p1359_p6 = scmp.lt.s32.totalorder %s1594_s21, 2 }
  0x59   : > { %s1782_s23 = scalar_select %p28_p4, %s1590_s20, %s30_s29  }
  0x5a   : > { %p39_p10 = por %p38_p13, %p37_p8  ;;  %p2064_p3 = scmp.eq.s32.totalorder %s1659_s22, 1 }
  0x5b   : > { %s219_s8 = sand.u32 1, %s1590_s20   ;;  %s1048_s9 = sshll.u32 %s1594_s21, 11 }
  0x5c   : > { %p1786_p5 = por %p2064_p3, %p37_p8  ;;  %s1032_s10 = sshll.u32 %s219_s8, 7 }
  0x5d   : > { %s1795_s27 = scalar_lea.hbm %s2050_s0, %s1048_s9  ;;  %s223_s28 = scalar_lea.vmem [#allocation2], %s1032_s10 }
  0x5e   : > { %s230_s6 = sshll.u32 %s223_s28, 4  ;;  %p1797_p11 = pnand %p1359_p6, %p39_p10  ;;  %s1801_s6 = int_to_ptr.vmem [resolvable:$true] %s230_s6 }
  0x5f   : > { %s1803_s17 = scalar_lea.sflag [#allocation3], %s219_s8  ;;  %s1490_s12 = scalar_lea.hbm %s1795_s27, 2048 }
  0x60   : > { %p1491_p7 = scmp.ne.s32.totalorder %s1795_s27, %s1490_s12  ;;  %p1492_p9 = pneg %p1797_p11 }
  0x61   : > { %s1495_s10 = scalar_lea.hbm %s2050_s0, 4096  ;;  %p1496_p2 = scmp.lt.u32.totalorder %s1795_s27, %s2050_s0 }
  0x62   : > { %p1493_p12 = pnand %p1492_p9, %p1491_p7  ;;  %p1497_p1 = scmp.lt.u32.totalorder %s1495_s10, %s1490_s12 }
  0x63   : > { %p1499_p8 = scmp.lt.u32.totalorder %s1490_s12, %s1795_s27 }
  0x64   : > { %p1494_p0 = pneg %p1493_p12  ;;  %p1498_p4 = por %p1497_p1, %p1496_p2 }
  0x66   : > { %p1500_p13 = por %p1499_p8, %p1498_p4 }
  0x68   : > { %p1501_p6 = pnand %p1500_p13, %p1494_p0 }
  0x6a   : > { %1504 = shalt.err (!%p1501_p6)
}
  0x6b   : > { %s1505_s8 = scalar_lea.vmem %s1801_s6, 2048  ;;  %s1603_s28 = smov [#allocation2]  }
  0x6c   : > { %p1506_p10 = scmp.ne.s32.totalorder %s1801_s6, %s1505_s8  ;;  %s1510_s29 = sshll.u32 %s1603_s28, 4  ;;  %s1511_s29 = int_to_ptr.vmem [resolvable:$false] %s1510_s29 }
  0x6d   : > { %s1512_s9 = scalar_lea.vmem %s1511_s29, 4096  ;;  %p1513_p12 = scmp.lt.s32.totalorder %s1801_s6, %s1511_s29 }
  0x6e   : > { %p1508_p3 = pnand %p1506_p10, %p1492_p9  ;;  %p1514_p2 = scmp.lt.s32.totalorder %s1512_s9, %s1505_s8 }
  0x70   : > { %p1509_p7 = pneg %p1508_p3  ;;  %p1515_p1 = por %p1514_p2, %p1513_p12 }
  0x72   : > { %p1516_p4 = pnand %p1515_p1, %p1509_p7 }
  0x74   : > { %1519 = shalt.err (!%p1516_p4)
}
  0x75   : > { %1351 = dma.hbm_to_vmem [thread:$0]  (!%p1797_p11), %s1795_s27, 2048, %s1801_s6, %s1803_s17, %s1600_s14, %s1600_s14, %s1601_s15  }
  0x76   : > { %p2067_p9 = scmp.ne.s32.totalorder %s2061_s26, 0 }
  0x77   : > { %s1837_s12 = sand.u32 (!%p2067_p9), 1, %s1586_s19   ;;  %p2068_p0 = scmp.ne.s32.totalorder (!%p2067_p9), %s2059_s24, 0 }
  0x78   : > { %242 = sbr.rel (%p2067_p9) target bundleno = 894 (0x37e), region = 40  ;;  %s1036_s10 = sshll.u32 (!%p2067_p9), %s1837_s12, 7 }
  0x79   : > { %s245_s11 = scalar_lea.sflag (!%p2067_p9), [#allocation3], %s1837_s12  ;;  %s1843_s16 = scalar_lea.vmem (!%p2067_p9), [#allocation2], %s1036_s10 }
  0x7f   : > { %1565 = dma.done.wait (%p2068_p0), %s245_s11, 2048  }
  0x80   : > { %1567 = vsyncadd (%p2068_p0), %s245_s11, 4294965248  ;;  %p2069_p11 = scmp.eq.s32.totalorder %s1659_s22, 0 }
  0x82   : > { %1569 = dma.done.wait (%p2069_p11), [#allocation6], 6144   ;;  %p2070_p8 = pmov %p2069_p11 }
  0x84   : > { %1571 = vsyncadd (%p2070_p8), [#allocation6], 4294961152  ;;  %p2071_p13 = pmov %p2070_p8 }
  0x85   : > { %p2072_p6 = pmov %p2070_p8 }
  0x86   : > { %1573 = dma.done.wait (%p2071_p13), [#allocation9], 2048  }
  0x87   : > { %1575 = vsyncadd (%p2072_p6), [#allocation9], 4294965248  ;;  %v1604_v0 = vmov 0.0   ;;  %v308_v1 = vld [vmem:[#allocation5 + $0x8] sm:$0xff]  ;;  %v310_v2 = vld [vmem:[#allocation5 + $0x18] sm:$0xff]  ;;  %s1953_s27 = scalar_lea.vmem [#allocation10], %s1036_s10 }
  0x88   : > { %403 = vmatprep.mubr.f32.mxu0 %v1604_v0  ;;  %v307_v3 = vld [vmem:[#allocation5] sm:$0xff]  ;;  %v1226_v4 = vpack.c.bf16 %v310_v2, %v308_v1  ;;  %v309_v5 = vld [vmem:[#allocation5 + $0x10] sm:$0xff]  ;;  %v312_v6 = vld [vmem:[#allocation5 + $0x28] sm:$0xff]  ;;  %s1049_s6 = sshll.u32 %s1659_s22, 11  ;;  %s924_s17 = sshll.u32 %s1953_s27, 4  ;;  %s2004_s17 = int_to_ptr.vmem [resolvable:$true] %s924_s17 }
  0x89   : > { %v314_v7 = vld [vmem:[#allocation5 + $0x38] sm:$0xff]  ;;  %v1228_v8 = vpack.c.bf16 %v309_v5, %v307_v3  ;;  %v311_v10 = vld [vmem:[#allocation5 + $0x20] sm:$0xff]  ;;  %v313_v11 = vld [vmem:[#allocation5 + $0x30] sm:$0xff]  ;;  %s2002_s28 = scalar_lea.hbm %s2055_s5, %s1049_s6  ;;  %s911_s22 = scalar_lea.sflag [#allocation4], %s1837_s12 }
  0x8a   : > { %v1230_v9 = vpack.c.bf16 %v314_v7, %v312_v6  ;;  %v316_v12 = vld [vmem:[#allocation5 + $0x48] sm:$0xff]  ;;  %1227 = vmatprep.subr.bf16.mxu0 %v1226_v4  ;;  %v318_v13 = vld [vmem:[#allocation5 + $0x58] sm:$0xff]  ;;  %v1232_v14 = vpack.c.bf16 %v313_v11, %v311_v10  ;;  %v315_v16 = vld [vmem:[#allocation5 + $0x40] sm:$0xff]  ;;  %s1520_s29 = scalar_lea.vmem %s2004_s17, 2048  ;;  %s1605_s9 = smov [#allocation10]  }
  0x8b   : > { %1229 = vmatpush1.bf16.msra.mxu0 %v1228_v8  ;;  %v1234_v15 = vpack.c.bf16 %v318_v13, %v316_v12  ;;  %v317_v17 = vld [vmem:[#allocation5 + $0x50] sm:$0xff]  ;;  %v320_v18 = vld [vmem:[#allocation5 + $0x68] sm:$0xff]  ;;  %v322_v19 = vld [vmem:[#allocation5 + $0x78] sm:$0xff]  ;;  %p1521_p10 = scmp.ne.s32.totalorder %s2004_s17, %s1520_s29  ;;  %s1524_s10 = sshll.u32 %s1605_s9, 4  ;;  %s1525_s10 = int_to_ptr.vmem [resolvable:$false] %s1524_s10 }
  0x8c   : > { %1231 = vmatprep.subr.bf16.mxu0 %v1230_v9  ;;  %v1236_v20 = vpack.c.bf16 %v317_v17, %v315_v16  ;;  %v1238_v21 = vpack.c.bf16 %v322_v19, %v320_v18  ;;  %v319_v22 = vld [vmem:[#allocation5 + $0x60] sm:$0xff]  ;;  %v321_v23 = vld [vmem:[#allocation5 + $0x70] sm:$0xff]  ;;  %v324_v24 = vld [vmem:[#allocation5 + $0x88] sm:$0xff]  ;;  %s1526_s11 = scalar_lea.vmem %s1525_s10, 4096  ;;  %p1527_p12 = scmp.lt.s32.totalorder %s2004_s17, %s1525_s10 }
  0x8d   : > { %v326_v25 = vld [vmem:[#allocation5 + $0x98] sm:$0xff]  ;;  %v1240_v26 = vpack.c.bf16 %v321_v23, %v319_v22  ;;  %v323_v28 = vld [vmem:[#allocation5 + $0x80] sm:$0xff]  ;;  %v325_v29 = vld [vmem:[#allocation5 + $0x90] sm:$0xff]  ;;  %p1522_p3 = pnand %p1521_p10, %p1786_p5  ;;  %p1528_p2 = scmp.lt.s32.totalorder %s1526_s11, %s1520_s29 }
  0x8e   : > { %v1242_v27 = vpack.c.bf16 %v326_v25, %v324_v24  ;;  %v328_v30 = vld [vmem:[#allocation5 + $0xa8] sm:$0xff]  ;;  %v330_v31 = vld [vmem:[#allocation5 + $0xb8] sm:$0xff]  ;;  %v327_v32 = vld [vmem:[#allocation5 + $0xa0] sm:$0xff]  ;;  %v1244_v33 = vpack.c.bf16 %v325_v29, %v323_v28 }
  0x8f   : > { %1233 = vmatpush1.bf16.msra.mxu0 %v1232_v14  ;;  %v536_v34 = vld [vmem:[#allocation7] sm:$0xff]  ;;  %v537_v35 = vld [vmem:[#allocation7 + $0x8] sm:$0xff]  ;;  %v538_v36 = vld [vmem:[#allocation7 + $0x10] sm:$0xff]  ;;  %v1246_v37 = vpack.c.bf16 %v330_v31, %v328_v30  ;;  %p1523_p7 = pneg %p1522_p3  ;;  %p1529_p1 = por %p1528_p2, %p1527_p12 }
  0x90   : > { %1235 = vmatprep.subr.bf16.mxu0 %v1234_v15  ;;  %v329_v38 = vld [vmem:[#allocation5 + $0xb0] sm:$0xff]  ;;  %v332_v39 = vld [vmem:[#allocation5 + $0xc8] sm:$0xff]  ;;  %v1258_v40 = vpack.c.bf16 %v537_v35, %v536_v34  ;;  %v539_v41 = vld [vmem:[#allocation7 + $0x18] sm:$0xff] }
  0x91   : > { %v334_v42 = vld [vmem:[#allocation5 + $0xd8] sm:$0xff]  ;;  %v1262_v43 = vpack.c.bf16 %v539_v41, %v538_v36  ;;  %v540_v44 = vld [vmem:[#allocation7 + $0x20] sm:$0xff]  ;;  %v541_v45 = vld [vmem:[#allocation7 + $0x28] sm:$0xff]  ;;  %v1248_v46 = vpack.c.bf16 %v329_v38, %v327_v32  ;;  %p1530_p4 = pnand %p1529_p1, %p1523_p7 }
  0x92   : > { %1259 = vmatprep.subr.bf16.mxu1 %v1258_v40  ;;  %v1250_v47 = vpack.c.bf16 %v334_v42, %v332_v39  ;;  %v331_v48 = vld [vmem:[#allocation5 + $0xc0] sm:$0xff]  ;;  %v333_v49 = vld [vmem:[#allocation5 + $0xd0] sm:$0xff]  ;;  %v336_v50 = vld [vmem:[#allocation5 + $0xe8] sm:$0xff]  ;;  %v1266_v51 = vpack.c.bf16 %v541_v45, %v540_v44 }
  0x93   : > { %1237 = vmatpush1.bf16.msra.mxu0 %v1236_v20  ;;  %1261 = vmatpush3.bf16.msra.mxu1 %v1258_v40  ;;  %v338_v52 = vld [vmem:[#allocation5 + $0xf8] sm:$0xff]  ;;  %v542_v53 = vld [vmem:[#allocation7 + $0x30] sm:$0xff]  ;;  %v1252_v55 = vpack.c.bf16 %v333_v49, %v331_v48  ;;  %v335_v57 = vld [vmem:[#allocation5 + $0xe0] sm:$0xff] }
  0x94   : > { %1239 = vmatprep.subr.bf16.mxu0 %v1238_v21  ;;  %1263 = vmatprep.subr.bf16.mxu1 %v1262_v43  ;;  %v543_v54 = vld [vmem:[#allocation7 + $0x38] sm:$0xff]  ;;  %v1254_v56 = vpack.c.bf16 %v338_v52, %v336_v50  ;;  %v337_v58 = vld [vmem:[#allocation5 + $0xf0] sm:$0xff]  ;;  %v544_v60 = vld [vmem:[#allocation7 + $0x40] sm:$0xff] }
  0x95   : > { %v1270_v59 = vpack.c.bf16 %v543_v54, %v542_v53  ;;  %v545_v61 = vld [vmem:[#allocation7 + $0x48] sm:$0xff]  ;;  %v1256_v62 = vpack.c.bf16 %v337_v58, %v335_v57  ;;  %v546_v1 = vld [vmem:[#allocation7 + $0x50] sm:$0xff]  ;;  %v547_v2 = vld [vmem:[#allocation7 + $0x58] sm:$0xff] }
  0x96   : > { %v1274_v63 = vpack.c.bf16 %v545_v61, %v544_v60  ;;  %v289_v3 = vld [vmem:[%s1843_s16] sm:$0xff]  ;;  %v1278_v4 = vpack.c.bf16 %v547_v2, %v546_v1  ;;  %v290_v5 = vld [vmem:[%s1843_s16 + $0x8] sm:$0xff]  ;;  %v291_v6 = vld [vmem:[%s1843_s16 + $0x10] sm:$0xff] }
  0x97   : > { %1241 = vmatpush1.bf16.msra.mxu0 %v1240_v26  ;;  %1265 = vmatpush3.bf16.msra.mxu1 %v1262_v43  ;;  %v292_v7 = vld [vmem:[%s1843_s16 + $0x18] sm:$0xff]  ;;  %v293_v8 = vld [vmem:[%s1843_s16 + $0x20] sm:$0xff]  ;;  %v294_v9 = vld [vmem:[%s1843_s16 + $0x28] sm:$0xff] }
  0x98   : > { %1243 = vmatprep.subr.bf16.mxu0 %v1242_v27  ;;  %1267 = vmatprep.subr.bf16.mxu1 %v1266_v51  ;;  %v295_v10 = vld [vmem:[%s1843_s16 + $0x30] sm:$0xff]  ;;  %v296_v11 = vld [vmem:[%s1843_s16 + $0x38] sm:$0xff]  ;;  %v297_v12 = vld [vmem:[%s1843_s16 + $0x40] sm:$0xff] }
  0x99   : > { %v298_v13 = vld [vmem:[%s1843_s16 + $0x48] sm:$0xff]  ;;  %v299_v14 = vld [vmem:[%s1843_s16 + $0x50] sm:$0xff]  ;;  %v300_v15 = vld [vmem:[%s1843_s16 + $0x58] sm:$0xff] }
  0x9a   : > { %v301_v16 = vld [vmem:[%s1843_s16 + $0x60] sm:$0xff]  ;;  %v302_v17 = vld [vmem:[%s1843_s16 + $0x68] sm:$0xff]  ;;  %v303_v18 = vld [vmem:[%s1843_s16 + $0x70] sm:$0xff] }
  0x9b   : > { %1245 = vmatpush1.bf16.msra.mxu0 %v1244_v33  ;;  %1269 = vmatpush3.bf16.msra.mxu1 %v1266_v51  ;;  %v304_v19 = vld [vmem:[%s1843_s16 + $0x78] sm:$0xff]  ;;  %v548_v20 = vld [vmem:[#allocation7 + $0x60] sm:$0xff]  ;;  %v549_v21 = vld [vmem:[#allocation7 + $0x68] sm:$0xff] }
  0x9c   : > { %1247 = vmatprep.subr.bf16.mxu0 %v1246_v37  ;;  %1271 = vmatprep.subr.bf16.mxu1 %v1270_v59  ;;  %v1282_v22 = vpack.c.bf16 %v549_v21, %v548_v20  ;;  %v550_v23 = vld [vmem:[#allocation7 + $0x70] sm:$0xff]  ;;  %v551_v24 = vld [vmem:[#allocation7 + $0x78] sm:$0xff]  ;;  %v697_v26 = vld [vmem:[#allocation8] sm:$0xff] }
  0x9d   : > { %v1286_v25 = vpack.c.bf16 %v551_v24, %v550_v23  ;;  %v698_v27 = vld [vmem:[#allocation8 + $0x8] sm:$0xff]  ;;  %v699_v34 = vld [vmem:[#allocation8 + $0x10] sm:$0xff]  ;;  %v700_v35 = vld [vmem:[#allocation8 + $0x18] sm:$0xff] }
  0x9e   : > { %v1290_v28 = vpack.c.bf16 %v698_v27, %v697_v26  ;;  %v1294_v39 = vpack.c.bf16 %v700_v35, %v699_v34  ;;  %v701_v41 = vld [vmem:[#allocation8 + $0x20] sm:$0xff]  ;;  %v702_v42 = vld [vmem:[#allocation8 + $0x28] sm:$0xff]  ;;  %v703_v48 = vld [vmem:[#allocation8 + $0x30] sm:$0xff] }
  0x9f   : > { %1249 = vmatpush1.bf16.msra.mxu0 %v1248_v46  ;;  %1273 = vmatpush3.bf16.msra.mxu1 %v1270_v59  ;;  %v1298_v46 = vpack.c.bf16 %v702_v42, %v701_v41  ;;  %v704_v49 = vld [vmem:[#allocation8 + $0x38] sm:$0xff] }
  0xa0   : > { %1251 = vmatprep.subr.bf16.mxu0 %v1250_v47  ;;  %1275 = vmatprep.subr.bf16.mxu1 %v1274_v63  ;;  %v1302_v53 = vpack.c.bf16 %v704_v49, %v703_v48 }
  0xa3   : > { %1253 = vmatpush1.bf16.msra.mxu0 %v1252_v55  ;;  %1277 = vmatpush3.bf16.msra.mxu1 %v1274_v63  ;;  %v705_v55 = vld [vmem:[#allocation8 + $0x40] sm:$0xff]  ;;  %v708_v63 = vld [vmem:[#allocation8 + $0x58] sm:$0xff] }
  0xa4   : > { %1255 = vmatprep.subr.bf16.mxu0 %v1254_v56  ;;  %1279 = vmatprep.subr.bf16.mxu1 %v1278_v4  ;;  %v706_v56 = vld [vmem:[#allocation8 + $0x48] sm:$0xff] }
  0xa5   : > { %v1306_v60 = vpack.c.bf16 %v706_v56, %v705_v55 }
  0xa7   : > { %1257 = vmatpush1.bf16.msra.mxu0 %v1256_v62  ;;  %1281 = vmatpush3.bf16.msra.mxu1 %v1278_v4  ;;  %v707_v62 = vld [vmem:[#allocation8 + $0x50] sm:$0xff] }
  0xa8   : > { %1283 = vmatprep.subr.bf16.mxu1 %v1282_v22  ;;  %v1310_v4 = vpack.c.bf16 %v708_v63, %v707_v62 }
  0xaa   : > { %404 = vmatmul.mubr.f32.vlgmr.msra.gmra.mrb[0].mxu0 %v289_v3 }
  0xab   : > { %409 = vmatprep.mubr.f32.mxu0 %v1604_v0  ;;  %1285 = vmatpush3.bf16.msra.mxu1 %v1282_v22 }
  0xac   : > { %1287 = vmatprep.subr.bf16.mxu1 %v1286_v25 }
  0xae   : > { %410 = vmatmul.mubr.f32.gmra.mrb[2].mxu0 %v290_v5 }
  0xaf   : > { %415 = vmatprep.mubr.f32.mxu0 %v1604_v0  ;;  %1289 = vmatpush3.bf16.msra.mxu1 %v1286_v25 }
  0xb0   : > { %1291 = vmatprep.subr.bf16.mxu1 %v1290_v28 }
  0xb2   : > { %416 = vmatmul.mubr.f32.gmra.mrb[4].mxu0 %v291_v6  ;;  %v709_v6 = vld [vmem:[#allocation8 + $0x60] sm:$0xff] }
  0xb3   : > { %421 = vmatprep.mubr.f32.mxu0 %v1604_v0 }
  0xb6   : > { %422 = vmatmul.mubr.f32.gmra.mrb[6].mxu0 %v292_v7  ;;  %v710_v7 = vld [vmem:[#allocation8 + $0x68] sm:$0xff] }
  0xb7   : > { %427 = vmatprep.mubr.f32.mxu0 %v1604_v0 }
  0xba   : > { %428 = vmatmul.mubr.f32.gmra.mrb[8].mxu0 %v293_v8 }
  0xbb   : > { %433 = vmatprep.mubr.f32.mxu0 %v1604_v0 }
  0xbe   : > { %434 = vmatmul.mubr.f32.gmra.mrb[10].mxu0 %v294_v9 }
  0xbf   : > { %439 = vmatprep.mubr.f32.mxu0 %v1604_v0 }
  0xc2   : > { %440 = vmatmul.mubr.f32.gmra.mrb[12].mxu0 %v295_v10 }
  0xc3   : > { %445 = vmatprep.mubr.f32.mxu0 %v1604_v0 }
  0xc6   : > { %446 = vmatmul.mubr.f32.gmra.mrb[14].mxu0 %v296_v11  ;;  %v1314_v11 = vpack.c.bf16 %v710_v7, %v709_v6 }
  0xc7   : > { %451 = vmatprep.mubr.f32.mxu0 %v1604_v0 }
  0xca   : > { %452 = vmatmul.mubr.f32.gmra.mrb[16].mxu0 %v297_v12 }
  0xcb   : > { %457 = vmatprep.mubr.f32.mxu0 %v1604_v0 }
  0xce   : > { %458 = vmatmul.mubr.f32.gmra.mrb[18].mxu0 %v298_v13  ;;  %v711_v13 = vld [vmem:[#allocation8 + $0x70] sm:$0xff] }
  0xcf   : > { %463 = vmatprep.mubr.f32.mxu0 %v1604_v0 }
  0xd2   : > { %464 = vmatmul.mubr.f32.gmra.mrb[20].mxu0 %v299_v14  ;;  %v712_v14 = vld [vmem:[#allocation8 + $0x78] sm:$0xff] }
  0xd3   : > { %469 = vmatprep.mubr.f32.mxu0 %v1604_v0 }
  0xd6   : > { %470 = vmatmul.mubr.f32.gmra.mrb[22].mxu0 %v300_v15 }
  0xd7   : > { %475 = vmatprep.mubr.f32.mxu0 %v1604_v0 }
  0xda   : > { %476 = vmatmul.mubr.f32.gmra.mrb[24].mxu0 %v301_v16 }
  0xdb   : > { %481 = vmatprep.mubr.f32.mxu0 %v1604_v0 }
  0xde   : > { %482 = vmatmul.mubr.f32.gmra.mrb[26].mxu0 %v302_v17 }
  0xdf   : > { %487 = vmatprep.mubr.f32.mxu0 %v1604_v0 }
  0xe2   : > { %488 = vmatmul.mubr.f32.gmra.mrb[28].mxu0 %v303_v18  ;;  %v1318_v18 = vpack.c.bf16 %v712_v14, %v711_v13 }
  0xe3   : > { %493 = vmatprep.mubr.f32.mxu0 %v1604_v0  ;;  %v1892_v0 = vld [vmem:[%s2054_s4] ss:$0 sm:$0xff] }
  0xe6   : > { %494 = vmatmul.mubr.f32.gmra.mrb[30].mxu0 %v304_v19 }
 0x17d   : > { %v405_v29 = vpop.f32.mrb[0].mxu0 }
 0x17e   : > { %v1894_v30 = vpop.f32.mrb[1].mxu0  ;;  %v504_v31 = vadd.f32 %v1892_v0, %v405_v29 }
 0x180   : > { %v520_v32 = vmax.f32 %v504_v31, 0.0 }
 0x181   : > { %v411_v33 = vpop.f32.mrb[2].mxu0 }
 0x182   : > { %v505_v36 = vadd.f32 %v1892_v0, %v411_v33  ;;  %v1898_v37 = vpop.f32.mrb[3].mxu0  ;;  %1146 = vmatprep.mubr.f32.mxu1 %v520_v32 }
 0x184   : > { %v521_v38 = vmax.f32 %v505_v36, 0.0 }
 0x185   : > { %v417_v40 = vpop.f32.mrb[4].mxu0 }
 0x186   : > { %v506_v43 = vadd.f32 %v1892_v0, %v417_v40  ;;  %v1901_v44 = vpop.f32.mrb[5].mxu0  ;;  %1147 = vmatmul.mubr.f32.vlgmr.msra.gmra.mrb[0].mxu1 %v521_v38 }
 0x187   : > { %1293 = vmatpush3.bf16.msra.mxu1 %v1290_v28 }
 0x188   : > { %v522_v45 = vmax.f32 %v506_v43, 0.0  ;;  %1295 = vmatprep.subr.bf16.mxu1 %v1294_v39 }
 0x189   : > { %v423_v47 = vpop.f32.mrb[6].mxu0 }
 0x18a   : > { %v507_v50 = vadd.f32 %v1892_v0, %v423_v47  ;;  %v1904_v51 = vpop.f32.mrb[7].mxu0  ;;  %1149 = vmatprep.mubr.f32.mxu1 %v522_v45 }
 0x18b   : > { %1297 = vmatpush3.bf16.msra.mxu1 %v1294_v39 }
 0x18c   : > { %v523_v52 = vmax.f32 %v507_v50, 0.0  ;;  %1299 = vmatprep.subr.bf16.mxu1 %v1298_v46 }
 0x18d   : > { %v429_v54 = vpop.f32.mrb[8].mxu0 }
 0x18e   : > { %v508_v57 = vadd.f32 %v1892_v0, %v429_v54  ;;  %v1907_v58 = vpop.f32.mrb[9].mxu0  ;;  %1150 = vmatmul.mubr.f32.gmra.mrb[2].mxu1 %v523_v52 }
 0x18f   : > { %1301 = vmatpush3.bf16.msra.mxu1 %v1298_v46 }
 0x190   : > { %v524_v59 = vmax.f32 %v508_v57, 0.0  ;;  %1303 = vmatprep.subr.bf16.mxu1 %v1302_v53 }
 0x191   : > { %v435_v61 = vpop.f32.mrb[10].mxu0 }
 0x192   : > { %v509_v1 = vadd.f32 %v1892_v0, %v435_v61  ;;  %v1910_v2 = vpop.f32.mrb[11].mxu0  ;;  %1152 = vmatprep.mubr.f32.mxu1 %v524_v59 }
 0x193   : > { %1305 = vmatpush3.bf16.msra.mxu1 %v1302_v53 }
 0x194   : > { %v525_v3 = vmax.f32 %v509_v1, 0.0  ;;  %1307 = vmatprep.subr.bf16.mxu1 %v1306_v60 }
 0x195   : > { %v441_v5 = vpop.f32.mrb[12].mxu0 }
 0x196   : > { %v510_v8 = vadd.f32 %v1892_v0, %v441_v5  ;;  %v1913_v9 = vpop.f32.mrb[13].mxu0  ;;  %1153 = vmatmul.mubr.f32.gmra.mrb[4].mxu1 %v525_v3 }
 0x197   : > { %1309 = vmatpush3.bf16.msra.mxu1 %v1306_v60 }
 0x198   : > { %v526_v10 = vmax.f32 %v510_v8, 0.0  ;;  %1311 = vmatprep.subr.bf16.mxu1 %v1310_v4 }
 0x199   : > { %v447_v12 = vpop.f32.mrb[14].mxu0 }
 0x19a   : > { %v511_v15 = vadd.f32 %v1892_v0, %v447_v12  ;;  %v1916_v16 = vpop.f32.mrb[15].mxu0  ;;  %1155 = vmatprep.mubr.f32.mxu1 %v526_v10  ;;  %v1945_v10 = vld [vmem:[%s2054_s4 + $0x1] ss:$0 sm:$0xff] }
 0x19b   : > { %1313 = vmatpush3.bf16.msra.mxu1 %v1310_v4 }
 0x19c   : > { %v527_v17 = vmax.f32 %v511_v15, 0.0  ;;  %1315 = vmatprep.subr.bf16.mxu1 %v1314_v11 }
 0x19d   : > { %v453_v19 = vpop.f32.mrb[16].mxu0 }
 0x19e   : > { %v512_v20 = vadd.f32 %v1892_v0, %v453_v19  ;;  %v1919_v21 = vpop.f32.mrb[17].mxu0  ;;  %1156 = vmatmul.mubr.f32.gmra.mrb[6].mxu1 %v527_v17 }
 0x19f   : > { %1317 = vmatpush3.bf16.msra.mxu1 %v1314_v11 }
 0x1a0   : > { %v528_v22 = vmax.f32 %v512_v20, 0.0  ;;  %1319 = vmatprep.subr.bf16.mxu1 %v1318_v18 }
 0x1a1   : > { %v459_v23 = vpop.f32.mrb[18].mxu0 }
 0x1a2   : > { %v513_v24 = vadd.f32 %v1892_v0, %v459_v23  ;;  %v1922_v25 = vpop.f32.mrb[19].mxu0  ;;  %1158 = vmatprep.mubr.f32.mxu1 %v528_v22 }
 0x1a3   : > { %1321 = vmatpush3.bf16.msra.mxu1 %v1318_v18 }
 0x1a4   : > { %v529_v26 = vmax.f32 %v513_v24, 0.0 }
 0x1a5   : > { %v465_v27 = vpop.f32.mrb[20].mxu0 }
 0x1a6   : > { %v514_v28 = vadd.f32 %v1892_v0, %v465_v27  ;;  %v1925_v29 = vpop.f32.mrb[21].mxu0  ;;  %1159 = vmatmul.mubr.f32.gmra.mrb[8].mxu1 %v529_v26 }
 0x1a8   : > { %v530_v31 = vmax.f32 %v514_v28, 0.0 }
 0x1a9   : > { %v471_v32 = vpop.f32.mrb[22].mxu0 }
 0x1aa   : > { %v515_v33 = vadd.f32 %v1892_v0, %v471_v32  ;;  %v1928_v34 = vpop.f32.mrb[23].mxu0  ;;  %1161 = vmatprep.mubr.f32.mxu1 %v530_v31 }
 0x1ac   : > { %v531_v35 = vmax.f32 %v515_v33, 0.0 }
 0x1ad   : > { %v477_v36 = vpop.f32.mrb[24].mxu0 }
 0x1ae   : > { %v516_v38 = vadd.f32 %v1892_v0, %v477_v36  ;;  %v1931_v39 = vpop.f32.mrb[25].mxu0  ;;  %1162 = vmatmul.mubr.f32.gmra.mrb[10].mxu1 %v531_v35 }
 0x1b0   : > { %v532_v40 = vmax.f32 %v516_v38, 0.0 }
 0x1b1   : > { %v483_v41 = vpop.f32.mrb[26].mxu0 }
 0x1b2   : > { %v517_v42 = vadd.f32 %v1892_v0, %v483_v41  ;;  %v1934_v43 = vpop.f32.mrb[27].mxu0  ;;  %1164 = vmatprep.mubr.f32.mxu1 %v532_v40 }
 0x1b4   : > { %v533_v45 = vmax.f32 %v517_v42, 0.0 }
 0x1b5   : > { %v489_v46 = vpop.f32.mrb[28].mxu0 }
 0x1b6   : > { %v518_v47 = vadd.f32 %v1892_v0, %v489_v46  ;;  %v1937_v48 = vpop.f32.mrb[29].mxu0  ;;  %1165 = vmatmul.mubr.f32.gmra.mrb[12].mxu1 %v533_v45 }
 0x1b8   : > { %v534_v49 = vmax.f32 %v518_v47, 0.0 }
 0x1b9   : > { %v495_v50 = vpop.f32.mrb[30].mxu0 }
 0x1ba   : > { %v519_v52 = vadd.f32 %v1892_v0, %v495_v50  ;;  %v1940_v53 = vpop.f32.mrb[31].mxu0  ;;  %1167 = vmatprep.mubr.f32.mxu1 %v534_v49 }
 0x1bc   : > { %v535_v54 = vmax.f32 %v519_v52, 0.0 }
 0x1be   : > { %1168 = vmatmul.mubr.f32.gmra.mrb[14].mxu1 %v535_v54 }
 0x259   : > { %v1148_v55 = vpop.f32.mrb[0].mxu1 }
 0x25a   : > { %v618_v56 = vpop.f32.mrb[1].mxu1 }
 0x25b   : > { %1202 = vmatprep.mubr.f32.mxu1 %v618_v56 }
 0x25c   : > { %1203 = vmatmul.mubr.f32.vlgmr.msra.gmra.mrb[16].mxu1 %v1148_v55 }
 0x261   : > { %v1151_v57 = vpop.f32.mrb[2].mxu1 }
 0x262   : > { %v628_v59 = vpop.f32.mrb[3].mxu1 }
 0x263   : > { %1205 = vmatprep.mubr.f32.mxu1 %v628_v59 }
 0x264   : > { %1206 = vmatmul.mubr.f32.gmra.mrb[18].mxu1 %v1151_v57 }
 0x269   : > { %v1154_v60 = vpop.f32.mrb[4].mxu1 }
 0x26a   : > { %v638_v61 = vpop.f32.mrb[5].mxu1 }
 0x26b   : > { %1208 = vmatprep.mubr.f32.mxu1 %v638_v61 }
 0x26c   : > { %1209 = vmatmul.mubr.f32.gmra.mrb[20].mxu1 %v1154_v60 }
 0x271   : > { %v1157_v62 = vpop.f32.mrb[6].mxu1 }
 0x272   : > { %v648_v63 = vpop.f32.mrb[7].mxu1 }
 0x273   : > { %1211 = vmatprep.mubr.f32.mxu1 %v648_v63 }
 0x274   : > { %1212 = vmatmul.mubr.f32.gmra.mrb[22].mxu1 %v1157_v62 }
 0x279   : > { %v1160_v0 = vpop.f32.mrb[8].mxu1 }
 0x27a   : > { %v658_v1 = vpop.f32.mrb[9].mxu1 }
 0x27b   : > { %1214 = vmatprep.mubr.f32.mxu1 %v658_v1 }
 0x27c   : > { %1215 = vmatmul.mubr.f32.gmra.mrb[24].mxu1 %v1160_v0 }
 0x281   : > { %v1163_v3 = vpop.f32.mrb[10].mxu1 }
 0x282   : > { %v668_v4 = vpop.f32.mrb[11].mxu1 }
 0x283   : > { %1217 = vmatprep.mubr.f32.mxu1 %v668_v4 }
 0x284   : > { %1218 = vmatmul.mubr.f32.gmra.mrb[26].mxu1 %v1163_v3 }
 0x289   : > { %v1166_v5 = vpop.f32.mrb[12].mxu1 }
 0x28a   : > { %v678_v6 = vpop.f32.mrb[13].mxu1 }
 0x28b   : > { %1220 = vmatprep.mubr.f32.mxu1 %v678_v6 }
 0x28c   : > { %1221 = vmatmul.mubr.f32.gmra.mrb[28].mxu1 %v1166_v5 }
 0x291   : > { %v1169_v7 = vpop.f32.mrb[14].mxu1 }
 0x292   : > { %v688_v8 = vpop.f32.mrb[15].mxu1 }
 0x293   : > { %1223 = vmatprep.mubr.f32.mxu1 %v688_v8 }
 0x294   : > { %1224 = vmatmul.mubr.f32.gmra.mrb[30].mxu1 %v1169_v7 }
 0x32f   : > { %v1204_v11 = vpop.f32.mrb[16].mxu1 }
 0x330   : > { %v785_v12 = vadd.f32 %v1204_v11, %v1898_v37  ;;  %v779_v13 = vpop.f32.mrb[17].mxu1 }
 0x331   : > { %v780_v14 = vadd.f32 %v779_v13, %v1894_v30 }
 0x332   : > { %v863_v15 = vadd.f32 %v1945_v10, %v785_v12 }
 0x333   : > { %v862_v17 = vadd.f32 %v1945_v10, %v780_v14 }
 0x334   : > { %v879_v18 = vmax.f32 %v863_v15, 0.0 }
 0x335   : > { %v878_v19 = vmax.f32 %v862_v17, 0.0 }
 0x336   : > { %895 = vst [vmem:[%s1953_s27 + $0x8] sm:$0xff] %v879_v18 }
 0x337   : > { %894 = vst [vmem:[%s1953_s27] sm:$0xff] %v878_v19  ;;  %v1207_v20 = vpop.f32.mrb[18].mxu1 }
 0x338   : > { %v795_v37 = vadd.f32 %v1207_v20, %v1904_v51  ;;  %v789_v22 = vpop.f32.mrb[19].mxu1 }
 0x339   : > { %v790_v30 = vadd.f32 %v789_v22, %v1901_v44 }
 0x33a   : > { %v865_v23 = vadd.f32 %v1945_v10, %v795_v37 }
 0x33b   : > { %v864_v24 = vadd.f32 %v1945_v10, %v790_v30 }
 0x33c   : > { %v881_v26 = vmax.f32 %v865_v23, 0.0 }
 0x33d   : > { %v880_v27 = vmax.f32 %v864_v24, 0.0 }
 0x33e   : > { %897 = vst [vmem:[%s1953_s27 + $0x18] sm:$0xff] %v881_v26 }
 0x33f   : > { %896 = vst [vmem:[%s1953_s27 + $0x10] sm:$0xff] %v880_v27  ;;  %v1210_v28 = vpop.f32.mrb[20].mxu1 }
 0x340   : > { %v805_v31 = vadd.f32 %v1210_v28, %v1910_v2  ;;  %v799_v32 = vpop.f32.mrb[21].mxu1 }
 0x341   : > { %v800_v51 = vadd.f32 %v799_v32, %v1907_v58 }
 0x342   : > { %v867_v33 = vadd.f32 %v1945_v10, %v805_v31 }
 0x343   : > { %v866_v44 = vadd.f32 %v1945_v10, %v800_v51 }
 0x344   : > { %v883_v35 = vmax.f32 %v867_v33, 0.0 }
 0x345   : > { %v882_v36 = vmax.f32 %v866_v44, 0.0 }
 0x346   : > { %899 = vst [vmem:[%s1953_s27 + $0x28] sm:$0xff] %v883_v35 }
 0x347   : > { %898 = vst [vmem:[%s1953_s27 + $0x20] sm:$0xff] %v882_v36  ;;  %v1213_v38 = vpop.f32.mrb[22].mxu1 }
 0x348   : > { %v815_v40 = vadd.f32 %v1213_v38, %v1916_v16  ;;  %v809_v41 = vpop.f32.mrb[23].mxu1 }
 0x349   : > { %v810_v2 = vadd.f32 %v809_v41, %v1913_v9 }
 0x34a   : > { %v869_v42 = vadd.f32 %v1945_v10, %v815_v40 }
 0x34b   : > { %v868_v58 = vadd.f32 %v1945_v10, %v810_v2 }
 0x34c   : > { %v885_v45 = vmax.f32 %v869_v42, 0.0 }
 0x34d   : > { %v884_v46 = vmax.f32 %v868_v58, 0.0 }
 0x34e   : > { %901 = vst [vmem:[%s1953_s27 + $0x38] sm:$0xff] %v885_v45 }
 0x34f   : > { %900 = vst [vmem:[%s1953_s27 + $0x30] sm:$0xff] %v884_v46  ;;  %v1216_v47 = vpop.f32.mrb[24].mxu1 }
 0x350   : > { %v825_v49 = vadd.f32 %v1216_v47, %v1922_v25  ;;  %v819_v50 = vpop.f32.mrb[25].mxu1 }
 0x351   : > { %v820_v16 = vadd.f32 %v819_v50, %v1919_v21 }
 0x352   : > { %v871_v52 = vadd.f32 %v1945_v10, %v825_v49 }
 0x353   : > { %v870_v9 = vadd.f32 %v1945_v10, %v820_v16 }
 0x354   : > { %v887_v54 = vmax.f32 %v871_v52, 0.0 }
 0x355   : > { %v886_v55 = vmax.f32 %v870_v9, 0.0 }
 0x356   : > { %903 = vst [vmem:[%s1953_s27 + $0x48] sm:$0xff] %v887_v54 }
 0x357   : > { %902 = vst [vmem:[%s1953_s27 + $0x40] sm:$0xff] %v886_v55  ;;  %v1219_v56 = vpop.f32.mrb[26].mxu1 }
 0x358   : > { %v835_v57 = vadd.f32 %v1219_v56, %v1928_v34  ;;  %v829_v59 = vpop.f32.mrb[27].mxu1 }
 0x359   : > { %v830_v25 = vadd.f32 %v829_v59, %v1925_v29 }
 0x35a   : > { %v873_v60 = vadd.f32 %v1945_v10, %v835_v57 }
 0x35b   : > { %v872_v21 = vadd.f32 %v1945_v10, %v830_v25 }
 0x35c   : > { %v889_v61 = vmax.f32 %v873_v60, 0.0 }
 0x35d   : > { %v888_v62 = vmax.f32 %v872_v21, 0.0 }
 0x35e   : > { %905 = vst [vmem:[%s1953_s27 + $0x58] sm:$0xff] %v889_v61 }
 0x35f   : > { %904 = vst [vmem:[%s1953_s27 + $0x50] sm:$0xff] %v888_v62  ;;  %v1222_v63 = vpop.f32.mrb[28].mxu1 }
 0x360   : > { %v845_v0 = vadd.f32 %v1222_v63, %v1934_v43  ;;  %v839_v1 = vpop.f32.mrb[29].mxu1 }
 0x361   : > { %v840_v34 = vadd.f32 %v839_v1, %v1931_v39 }
 0x362   : > { %v875_v3 = vadd.f32 %v1945_v10, %v845_v0 }
 0x363   : > { %v874_v29 = vadd.f32 %v1945_v10, %v840_v34 }
 0x364   : > { %v891_v4 = vmax.f32 %v875_v3, 0.0 }
 0x365   : > { %v890_v5 = vmax.f32 %v874_v29, 0.0 }
 0x366   : > { %907 = vst [vmem:[%s1953_s27 + $0x68] sm:$0xff] %v891_v4 }
 0x367   : > { %906 = vst [vmem:[%s1953_s27 + $0x60] sm:$0xff] %v890_v5  ;;  %v1225_v6 = vpop.f32.mrb[30].mxu1 }
 0x368   : > { %v855_v7 = vadd.f32 %v1225_v6, %v1940_v53  ;;  %v849_v8 = vpop.f32.mrb[31].mxu1 }
 0x369   : > { %v850_v43 = vadd.f32 %v849_v8, %v1937_v48 }
 0x36a   : > { %v877_v39 = vadd.f32 %v1945_v10, %v855_v7 }
 0x36b   : > { %v876_v11 = vadd.f32 %v1945_v10, %v850_v43 }
 0x36c   : > { %v893_v12 = vmax.f32 %v877_v39, 0.0 }
 0x36d   : > { %v892_v53 = vmax.f32 %v876_v11, 0.0 }
 0x36e   : > { %909 = vst [vmem:[%s1953_s27 + $0x78] sm:$0xff] %v893_v12 }
 0x36f   : > { %908 = vst [vmem:[%s1953_s27 + $0x70] sm:$0xff] %v892_v53 }
 0x370   : > { %1533 = shalt.err (!%p1530_p4)
}
 0x371   : > { %s1534_s16 = scalar_lea.hbm %s2002_s28, 2048  ;;  %s1538_s14 = scalar_lea.hbm %s2055_s5, 4096 }
 0x372   : > { %p1535_p9 = scmp.ne.s32.totalorder %s2002_s28, %s1534_s16  ;;  %p1539_p8 = scmp.lt.u32.totalorder %s2002_s28, %s2055_s5 }
 0x373   : > { %p1540_p13 = scmp.lt.u32.totalorder %s1538_s14, %s1534_s16  ;;  %p1542_p10 = scmp.lt.u32.totalorder %s1534_s16, %s2002_s28 }
 0x374   : > { %p1536_p0 = pnand %p1535_p9, %p1786_p5 }
 0x375   : > { %p1541_p6 = por %p1540_p13, %p1539_p8 }
 0x376   : > { %p1537_p11 = pneg %p1536_p0 }
 0x377   : > { %p1543_p3 = por %p1542_p10, %p1541_p6 }
 0x379   : > { %p1544_p7 = pnand %p1543_p3, %p1537_p11 }
 0x37b   : > { %1547 = shalt.err (!%p1544_p7)
}
 0x37c   : > { %s1606_s6 = smov 128   ;;  %s1607_s13 = smov 8  }
 0x37d   : > { %1336 = dma.vmem_to_hbm [thread:$0]  (%p1786_p5), %s2004_s17, 2048, %s2002_s28, %s911_s22, %s1606_s6, %s1606_s6, %s1607_s13  }
 0x37e PF: > { %s939_s8 = sand.u32 1, %s1582_s18   ;;  %p2073_p12 = scmp.ne.s32.totalorder %s2060_s25, 0 }
 0x37f   : > { %p2074_p2 = scmp.ge.s32.totalorder %s1594_s21, 2  ;;  %s940_s29 = scalar_lea.sflag [#allocation4], %s939_s8 }
 0x381   : > { %p1353_p1 = pnand %p2074_p2, %p2073_p12 }
 0x383   : > { %1577 = dma.done.wait (!%p1353_p1), %s940_s29, 2048  }
 0x384   : > { %1579 = vsyncadd (!%p1353_p1), %s940_s29, 4294965248  ;;  %p20_p4 = scmp.ge.s32.totalorder %s1751_s30, 4   ;;  %s2075_s18 = smov %s1586_s19 }
 0x385   : > { %s2076_s19 = smov %s1590_s20  ;;  %s2077_s20 = smov %s1782_s23 }
 0x386   : > { %s2078_s21 = smov %s1751_s30  ;;  %22 = sbr.rel (!%p20_p4) target bundleno = 7 (0x7), region = 97 }
 0x38d   :  { %945 = vsyncpa [#allocation3], 1 }
 0x38e   :  { %947 = vsyncpa [#allocation3 + $0x1], 1 }
 0x38f   :  { %948 = vsyncpa [#allocation6], 1 }
 0x390   :  { %949 = vsyncpa [#allocation9], 1 }
 0x391   :  { %950 = vsyncpa [#allocation4], 1 }
 0x392   :  { %952 = vsyncpa [#allocation4 + $0x1], 1 }

</bundles_post_ra>
